<compile_context>
chip_gen: v7x
topology: tpu7x:2x2x1
jax: 0.10.0
libtpu: 0.0.40
codegen_flags: <defaults>
</compile_context>

<pallas_src>
import functools

import jax
import jax.numpy as jnp
from jax.experimental import pallas as pl
from jax.experimental.pallas import tpu as pltpu


def stsc_apply_kernel(x_ref, wg_ref, y_ref, *, time_rf_conv):
    """Fused depthwise temporal conv + gate on one (BC, HW) tile.

    x_ref  : [T, BCt, HWt]  input tile (input dtype)
    wg_ref : [BCt, T*Kc]    fused table, f32:  wg[bc, t*Kc+k] = gate[bc,t]*w[bc,k]
    y_ref  : [T, BCt, HWt]  output tile
    """
    Kc = time_rf_conv
    pc = (Kc - 1) // 2
    T = x_ref.shape[0]

    wg = wg_ref[...]  # tiny; single load

    def load(s):
        if 0 <= s < T:
            return x_ref[s].astype(jnp.float32)
        return None

    # Rolling window: window[k] holds the f32 cast of x[t + k - pc] for the
    # current t, so each time slice is loaded & converted exactly once and
    # reused for all of its Kc tap contributions.
    window = [load(d - pc) for d in range(Kc)]   # slices for t = 0
    for t in range(T):
        acc = None
        for k in range(Kc):
            xs = window[k]
            if xs is None:          # boundary tap — reference zero-padding
                continue
            idx = t * Kc + k
            # (BCt, 1) column — no materialized full-tile broadcast.
            term = xs * wg[:, idx:idx + 1]
            acc = term if acc is None else acc + term
        # Center tap (k == pc) is always in range, so acc is never None.
        y_ref[t] = acc.astype(y_ref.dtype)
        if t + 1 < T:
            window = window[1:] + [load(t + 1 + pc)]


def _round_up(v, m):
    return ((v + m - 1) // m) * m


def _pick_tile(full, unit, cap):
    """Largest multiple of `unit` that divides `full` and is <= cap (>= unit).
    Requires full % unit == 0 (guaranteed by wrapper-side padding), so it can
    never return a tile larger than `cap` (beyond the `unit` floor)."""
    cap = max(unit, min(cap, full))
    t = (cap // unit) * unit
    while full % t != 0:
        t -= unit
    return t


@jax.jit
def stsc_forward(x_seq, w_conv, w_T, b_T, w_L):
    """STSC forward for 5D input [T, B, C, H, W] (dimension=4, gate + filter).

    w_conv : [C, Kc]     depthwise Conv3d weights (squeezed from [C,1,Kc,1,1])
    w_T    : [R, C, Ka]  attention Conv1d weights
    b_T    : [R]         attention Conv1d bias
    w_L    : [C, R]      attention Linear weights (PyTorch [out, in])
    """
    T, B, C, H, W = x_seq.shape
    HW = H * W
    BC = B * C
    Kc = w_conv.shape[1]
    Ka = w_T.shape[2]
    assert Kc % 2 == 1 and Ka % 2 == 1, "only odd temporal receptive fields keep length T"

    # ---- attention / gate path (tiny: T*B*C values) — plain XLA -------------
    avg = jnp.mean(x_seq, axis=(3, 4), dtype=jnp.float32)           # [T, B, C]
    pa = (Ka - 1) // 2
    ap = jnp.pad(avg, ((pa, pa), (0, 0), (0, 0)))
    recv = sum(jnp.einsum('tbc,rc->tbr', ap[k:k + T], w_T[:, :, k].astype(jnp.float32))
               for k in range(Ka))
    recv = recv + b_T.astype(jnp.float32)[None, None, :]
    hid = jax.nn.relu(recv)
    d = jnp.einsum('tbr,cr->tbc', hid, w_L.astype(jnp.float32))
    gate = 1.0 - jax.nn.sigmoid(d)                                   # [T, B, C]
    gate_bct = jnp.transpose(gate.reshape(T, BC), (1, 0))            # [BC, T]

    # Fold the gate into the depthwise taps (removes one full-tile multiply per
    # timestep in the kernel):  wg[bc, t*Kc + k] = gate[bc, t] * w[bc, k].
    w_bc = jnp.tile(w_conv.astype(jnp.float32), (B, 1))              # [BC, Kc]
    wg = (gate_bct[:, :, None] * w_bc[:, None, :]).reshape(BC, T * Kc)

    # ---- streamed conv + gate apply (Pallas) --------------------------------
    itemsize = jnp.dtype(x_seq.dtype).itemsize
    sub_unit = max(8, 32 // itemsize)     # dtype-aware sublane packing unit
    lane_unit = 128

    # Pad to lane/sublane-dense extents: every tile is an exact aligned divisor
    # (no masked vst.msk partial stores, no over-budget fallback tile).
    BCp = _round_up(BC, sub_unit)
    HWp = _round_up(HW, lane_unit)
    x3 = x_seq.reshape(T, BC, HW)                                    # no dtype cast
    if BCp != BC or HWp != HW:
        x3 = jnp.pad(x3, ((0, 0), (0, BCp - BC), (0, HWp - HW)))
    if BCp != BC:
        wg = jnp.pad(wg, ((0, BCp - BC), (0, 0)))

    # ~6 MiB per x tile buffer: double-buffered in + out ~ 24 MiB plus f32
    # rolling-window scratch, under the explicit 48 MiB VMEM limit below
    # (safe headroom on v7x's 64 MiB physical; trivially fine on v5e/v6e).
    tile_budget_bytes = 6 * 1024 * 1024
    elem_budget = max(tile_budget_bytes // (T * itemsize), sub_unit * lane_unit)
    hw_t = _pick_tile(HWp, lane_unit, elem_budget)
    bc_t = _pick_tile(BCp, sub_unit, max(sub_unit, elem_budget // hw_t))

    # v7x megacore: aim for >= 4 grid steps (prefer splitting HW in
    # 128-multiples) so both TensorCores get >= 2 steps each.
    while (BCp // bc_t) * (HWp // hw_t) < 4:
        if hw_t >= 2 * lane_unit and (hw_t // 2) % lane_unit == 0:
            hw_t //= 2
        elif bc_t >= 2 * sub_unit and (bc_t // 2) % sub_unit == 0:
            bc_t //= 2
        else:
            break
    grid = (BCp // bc_t, HWp // hw_t)

    # NOTE: input_output_aliases={0: 0} would be safe (identical index maps,
    # disjoint blocks) and saves an HBM allocation, but only pays off when the
    # caller donates x_seq; left off here to avoid a defensive copy.
    kernel = functools.partial(stsc_apply_kernel, time_rf_conv=Kc)
    y3 = pl.pallas_call(
        kernel,
        out_shape=jax.ShapeDtypeStruct((T, BCp, HWp), x_seq.dtype),
        grid_spec=pltpu.PrefetchScalarGridSpec(
            num_scalar_prefetch=0,
            grid=grid,
            in_specs=[
                pl.BlockSpec((T, bc_t, hw_t), lambda i, j: (0, i, j)),
                pl.BlockSpec((bc_t, T * Kc), lambda i, j: (i, 0)),
            ],
            out_specs=pl.BlockSpec((T, bc_t, hw_t), lambda i, j: (0, i, j)),
        ),
        compiler_params=pltpu.CompilerParams(
            dimension_semantics=("parallel", "parallel"),
            vmem_limit_bytes=48 * 1024 * 1024,
        ),
    )(x3, wg)
    y3 = y3[:, :BC, :HW]
    return y3.reshape(T, B, C, H, W)


def stsc_reference(x_seq, w_conv, w_T, b_T, w_L):
    """Pure-JAX reference matching the PyTorch STSC forward (dimension=4)."""
    T, B, C, H, W = x_seq.shape
    Kc = w_conv.shape[1]
    pc = (Kc - 1) // 2
    xp = jnp.pad(x_seq, ((pc, pc), (0, 0), (0, 0), (0, 0), (0, 0)))
    conv = sum(xp[k:k + T] * w_conv[:, k][None, None, :, None, None]
               for k in range(Kc))

    avg = x_seq.mean(axis=(3, 4))                            # [T, B, C]
    Ka = w_T.shape[2]
    pa = (Ka - 1) // 2
    ap = jnp.pad(avg, ((pa, pa), (0, 0), (0, 0)))
    recv = sum(jnp.einsum('tbc,rc->tbr', ap[k:k + T], w_T[:, :, k])
               for k in range(Ka)) + b_T[None, None, :]
    hid = jnp.maximum(recv, 0.0)
    d = jnp.einsum('tbr,cr->tbc', hid, w_L)
    gate = 1.0 - jax.nn.sigmoid(d)
    return conv * gate[:, :, :, None, None]


if __name__ == "__main__":
    def run_case(T, B, C, H, W, reduction, Kc, Ka):
        R = max(C // reduction, 1)
        key = jax.random.PRNGKey(0)
        k1, k2, k3, k4, k5 = jax.random.split(key, 5)
        x_seq = jax.random.normal(k1, (T, B, C, H, W), jnp.float32)
        w_conv = jax.random.normal(k2, (C, Kc), jnp.float32) * 0.5   # Conv3d depthwise
        w_T = jax.random.normal(k3, (R, C, Ka), jnp.float32) * 0.5   # Conv1d weight
        b_T = jax.random.normal(k4, (R,), jnp.float32) * 0.1         # Conv1d bias
        w_L = jax.random.normal(k5, (C, R), jnp.float32) * 0.5       # Linear [out, in]

        y = jax.block_until_ready(stsc_forward(x_seq, w_conv, w_T, b_T, w_L))
        y_ref = stsc_reference(x_seq, w_conv, w_T, b_T, w_L)
        assert y.shape == (T, B, C, H, W)
        assert jnp.allclose(y, y_ref, rtol=1e-4, atol=1e-4), "mismatch vs reference"

    # Small shapes consistent with the module (tiny grid).
    run_case(T=8, B=2, C=4, H=16, W=16, reduction=1, Kc=3, Ka=3)
    # Larger shape exercising the tiled multi-block grid (B*C folded on sublanes).
    run_case(T=8, B=4, C=32, H=32, W=32, reduction=2, Kc=3, Ka=3)

    print("KERNEL_OK")
</pallas_src>

<mosaic_0001>
module attributes {stable_mosaic.version = 11 : i64} {
  func.func @stsc_apply_kernel(%arg0: i32, %arg1: i32, %arg2: memref<8x8x128xf32, #tpu.memory_space<vmem>>, %arg3: memref<8x24xf32, #tpu.memory_space<vmem>>, %arg4: memref<8x8x128xf32, #tpu.memory_space<vmem>>) attributes {dimension_semantics = [#tpu.dimension_semantics<parallel>, #tpu.dimension_semantics<parallel>], iteration_bounds = array<i64: 1, 2>, scalar_prefetch = 0 : i64, scratch_operands = 0 : i64, tpu.core_type = #tpu.core_type<tc>, window_params = [{transform_indices = @transform_0, window_bounds = array<i64: 8, 8, 128>}, {transform_indices = @transform_1, window_bounds = array<i64: 8, 24>}, {transform_indices = @transform_2, window_bounds = array<i64: 8, 8, 128>}]} {
    %c0 = arith.constant 0 : index
    %c0_0 = arith.constant 0 : index
    %0 = vector.load %arg3[%c0, %c0_0] : memref<8x24xf32, #tpu.memory_space<vmem>>, vector<8x24xf32>
    %c0_1 = arith.constant 0 : index
    %c0_2 = arith.constant 0 : index
    %c0_3 = arith.constant 0 : index
    %1 = vector.load %arg2[%c0_1, %c0_2, %c0_3] : memref<8x8x128xf32, #tpu.memory_space<vmem>>, vector<1x8x128xf32>
    %2 = vector.shape_cast %1 : vector<1x8x128xf32> to vector<8x128xf32>
    %c1 = arith.constant 1 : index
    %c0_4 = arith.constant 0 : index
    %c0_5 = arith.constant 0 : index
    %3 = vector.load %arg2[%c1, %c0_4, %c0_5] : memref<8x8x128xf32, #tpu.memory_space<vmem>>, vector<1x8x128xf32>
    %4 = vector.shape_cast %3 : vector<1x8x128xf32> to vector<8x128xf32>
    %5 = vector.extract_strided_slice %0 {offsets = [0, 1], sizes = [8, 1], strides = [1, 1]} : vector<8x24xf32> to vector<8x1xf32>
    %6 = vector.broadcast %5 : vector<8x1xf32> to vector<8x128xf32>
    %7 = arith.mulf %2, %6 : vector<8x128xf32>
    %8 = vector.extract_strided_slice %0 {offsets = [0, 2], sizes = [8, 1], strides = [1, 1]} : vector<8x24xf32> to vector<8x1xf32>
    %9 = vector.broadcast %8 : vector<8x1xf32> to vector<8x128xf32>
    %10 = arith.mulf %4, %9 : vector<8x128xf32>
    %11 = arith.addf %7, %10 : vector<8x128xf32>
    %c0_6 = arith.constant 0 : index
    %c0_7 = arith.constant 0 : index
    %c0_8 = arith.constant 0 : index
    %12 = vector.load %arg4[%c0_6, %c0_7, %c0_8] : memref<8x8x128xf32, #tpu.memory_space<vmem>>, vector<1x8x128xf32>
    %13 = vector.shape_cast %12 : vector<1x8x128xf32> to vector<8x128xf32>
    %14 = vector.shape_cast %11 : vector<8x128xf32> to vector<1x8x128xf32>
    tpu.vector_store %arg4[%c0_6, %c0_7, %c0_8], %14 {strides = array<i32>} : memref<8x8x128xf32, #tpu.memory_space<vmem>>, vector<1x8x128xf32>,
    %c2 = arith.constant 2 : index
    %c0_9 = arith.constant 0 : index
    %c0_10 = arith.constant 0 : index
    %15 = vector.load %arg2[%c2, %c0_9, %c0_10] : memref<8x8x128xf32, #tpu.memory_space<vmem>>, vector<1x8x128xf32>
    %16 = vector.shape_cast %15 : vector<1x8x128xf32> to vector<8x128xf32>
    %17 = vector.extract_strided_slice %0 {offsets = [0, 3], sizes = [8, 1], strides = [1, 1]} : vector<8x24xf32> to vector<8x1xf32>
    %18 = vector.broadcast %17 : vector<8x1xf32> to vector<8x128xf32>
    %19 = arith.mulf %2, %18 : vector<8x128xf32>
    %20 = vector.extract_strided_slice %0 {offsets = [0, 4], sizes = [8, 1], strides = [1, 1]} : vector<8x24xf32> to vector<8x1xf32>
    %21 = vector.broadcast %20 : vector<8x1xf32> to vector<8x128xf32>
    %22 = arith.mulf %4, %21 : vector<8x128xf32>
    %23 = arith.addf %19, %22 : vector<8x128xf32>
    %24 = vector.extract_strided_slice %0 {offsets = [0, 5], sizes = [8, 1], strides = [1, 1]} : vector<8x24xf32> to vector<8x1xf32>
    %25 = vector.broadcast %24 : vector<8x1xf32> to vector<8x128xf32>
    %26 = arith.mulf %16, %25 : vector<8x128xf32>
    %27 = arith.addf %23, %26 : vector<8x128xf32>
    %c1_11 = arith.constant 1 : index
    %c0_12 = arith.constant 0 : index
    %c0_13 = arith.constant 0 : index
    %28 = vector.load %arg4[%c1_11, %c0_12, %c0_13] : memref<8x8x128xf32, #tpu.memory_space<vmem>>, vector<1x8x128xf32>
    %29 = vector.shape_cast %28 : vector<1x8x128xf32> to vector<8x128xf32>
    %30 = vector.shape_cast %27 : vector<8x128xf32> to vector<1x8x128xf32>
    tpu.vector_store %arg4[%c1_11, %c0_12, %c0_13], %30 {strides = array<i32>} : memref<8x8x128xf32, #tpu.memory_space<vmem>>, vector<1x8x128xf32>,
    %c3 = arith.constant 3 : index
    %c0_14 = arith.constant 0 : index
    %c0_15 = arith.constant 0 : index
    %31 = vector.load %arg2[%c3, %c0_14, %c0_15] : memref<8x8x128xf32, #tpu.memory_space<vmem>>, vector<1x8x128xf32>
    %32 = vector.shape_cast %31 : vector<1x8x128xf32> to vector<8x128xf32>
    %33 = vector.extract_strided_slice %0 {offsets = [0, 6], sizes = [8, 1], strides = [1, 1]} : vector<8x24xf32> to vector<8x1xf32>
    %34 = vector.broadcast %33 : vector<8x1xf32> to vector<8x128xf32>
    %35 = arith.mulf %4, %34 : vector<8x128xf32>
    %36 = vector.extract_strided_slice %0 {offsets = [0, 7], sizes = [8, 1], strides = [1, 1]} : vector<8x24xf32> to vector<8x1xf32>
    %37 = vector.broadcast %36 : vector<8x1xf32> to vector<8x128xf32>
    %38 = arith.mulf %16, %37 : vector<8x128xf32>
    %39 = arith.addf %35, %38 : vector<8x128xf32>
    %40 = vector.extract_strided_slice %0 {offsets = [0, 8], sizes = [8, 1], strides = [1, 1]} : vector<8x24xf32> to vector<8x1xf32>
    %41 = vector.broadcast %40 : vector<8x1xf32> to vector<8x128xf32>
    %42 = arith.mulf %32, %41 : vector<8x128xf32>
    %43 = arith.addf %39, %42 : vector<8x128xf32>
    %c2_16 = arith.constant 2 : index
    %c0_17 = arith.constant 0 : index
    %c0_18 = arith.constant 0 : index
    %44 = vector.load %arg4[%c2_16, %c0_17, %c0_18] : memref<8x8x128xf32, #tpu.memory_space<vmem>>, vector<1x8x128xf32>
    %45 = vector.shape_cast %44 : vector<1x8x128xf32> to vector<8x128xf32>
    %46 = vector.shape_cast %43 : vector<8x128xf32> to vector<1x8x128xf32>
    tpu.vector_store %arg4[%c2_16, %c0_17, %c0_18], %46 {strides = array<i32>} : memref<8x8x128xf32, #tpu.memory_space<vmem>>, vector<1x8x128xf32>,
    %c4 = arith.constant 4 : index
    %c0_19 = arith.constant 0 : index
    %c0_20 = arith.constant 0 : index
    %47 = vector.load %arg2[%c4, %c0_19, %c0_20] : memref<8x8x128xf32, #tpu.memory_space<vmem>>, vector<1x8x128xf32>
    %48 = vector.shape_cast %47 : vector<1x8x128xf32> to vector<8x128xf32>
    %49 = vector.extract_strided_slice %0 {offsets = [0, 9], sizes = [8, 1], strides = [1, 1]} : vector<8x24xf32> to vector<8x1xf32>
    %50 = vector.broadcast %49 : vector<8x1xf32> to vector<8x128xf32>
    %51 = arith.mulf %16, %50 : vector<8x128xf32>
    %52 = vector.extract_strided_slice %0 {offsets = [0, 10], sizes = [8, 1], strides = [1, 1]} : vector<8x24xf32> to vector<8x1xf32>
    %53 = vector.broadcast %52 : vector<8x1xf32> to vector<8x128xf32>
    %54 = arith.mulf %32, %53 : vector<8x128xf32>
    %55 = arith.addf %51, %54 : vector<8x128xf32>
    %56 = vector.extract_strided_slice %0 {offsets = [0, 11], sizes = [8, 1], strides = [1, 1]} : vector<8x24xf32> to vector<8x1xf32>
    %57 = vector.broadcast %56 : vector<8x1xf32> to vector<8x128xf32>
    %58 = arith.mulf %48, %57 : vector<8x128xf32>
    %59 = arith.addf %55, %58 : vector<8x128xf32>
    %c3_21 = arith.constant 3 : index
    %c0_22 = arith.constant 0 : index
    %c0_23 = arith.constant 0 : index
    %60 = vector.load %arg4[%c3_21, %c0_22, %c0_23] : memref<8x8x128xf32, #tpu.memory_space<vmem>>, vector<1x8x128xf32>
    %61 = vector.shape_cast %60 : vector<1x8x128xf32> to vector<8x128xf32>
    %62 = vector.shape_cast %59 : vector<8x128xf32> to vector<1x8x128xf32>
    tpu.vector_store %arg4[%c3_21, %c0_22, %c0_23], %62 {strides = array<i32>} : memref<8x8x128xf32, #tpu.memory_space<vmem>>, vector<1x8x128xf32>,
    %c5 = arith.constant 5 : index
    %c0_24 = arith.constant 0 : index
    %c0_25 = arith.constant 0 : index
    %63 = vector.load %arg2[%c5, %c0_24, %c0_25] : memref<8x8x128xf32, #tpu.memory_space<vmem>>, vector<1x8x128xf32>
    %64 = vector.shape_cast %63 : vector<1x8x128xf32> to vector<8x128xf32>
    %65 = vector.extract_strided_slice %0 {offsets = [0, 12], sizes = [8, 1], strides = [1, 1]} : vector<8x24xf32> to vector<8x1xf32>
    %66 = vector.broadcast %65 : vector<8x1xf32> to vector<8x128xf32>
    %67 = arith.mulf %32, %66 : vector<8x128xf32>
    %68 = vector.extract_strided_slice %0 {offsets = [0, 13], sizes = [8, 1], strides = [1, 1]} : vector<8x24xf32> to vector<8x1xf32>
    %69 = vector.broadcast %68 : vector<8x1xf32> to vector<8x128xf32>
    %70 = arith.mulf %48, %69 : vector<8x128xf32>
    %71 = arith.addf %67, %70 : vector<8x128xf32>
    %72 = vector.extract_strided_slice %0 {offsets = [0, 14], sizes = [8, 1], strides = [1, 1]} : vector<8x24xf32> to vector<8x1xf32>
    %73 = vector.broadcast %72 : vector<8x1xf32> to vector<8x128xf32>
    %74 = arith.mulf %64, %73 : vector<8x128xf32>
    %75 = arith.addf %71, %74 : vector<8x128xf32>
    %c4_26 = arith.constant 4 : index
    %c0_27 = arith.constant 0 : index
    %c0_28 = arith.constant 0 : index
    %76 = vector.load %arg4[%c4_26, %c0_27, %c0_28] : memref<8x8x128xf32, #tpu.memory_space<vmem>>, vector<1x8x128xf32>
    %77 = vector.shape_cast %76 : vector<1x8x128xf32> to vector<8x128xf32>
    %78 = vector.shape_cast %75 : vector<8x128xf32> to vector<1x8x128xf32>
    tpu.vector_store %arg4[%c4_26, %c0_27, %c0_28], %78 {strides = array<i32>} : memref<8x8x128xf32, #tpu.memory_space<vmem>>, vector<1x8x128xf32>,
    %c6 = arith.constant 6 : index
    %c0_29 = arith.constant 0 : index
    %c0_30 = arith.constant 0 : index
    %79 = vector.load %arg2[%c6, %c0_29, %c0_30] : memref<8x8x128xf32, #tpu.memory_space<vmem>>, vector<1x8x128xf32>
    %80 = vector.shape_cast %79 : vector<1x8x128xf32> to vector<8x128xf32>
    %81 = vector.extract_strided_slice %0 {offsets = [0, 15], sizes = [8, 1], strides = [1, 1]} : vector<8x24xf32> to vector<8x1xf32>
    %82 = vector.broadcast %81 : vector<8x1xf32> to vector<8x128xf32>
    %83 = arith.mulf %48, %82 : vector<8x128xf32>
    %84 = vector.extract_strided_slice %0 {offsets = [0, 16], sizes = [8, 1], strides = [1, 1]} : vector<8x24xf32> to vector<8x1xf32>
    %85 = vector.broadcast %84 : vector<8x1xf32> to vector<8x128xf32>
    %86 = arith.mulf %64, %85 : vector<8x128xf32>
    %87 = arith.addf %83, %86 : vector<8x128xf32>
    %88 = vector.extract_strided_slice %0 {offsets = [0, 17], sizes = [8, 1], strides = [1, 1]} : vector<8x24xf32> to vector<8x1xf32>
    %89 = vector.broadcast %88 : vector<8x1xf32> to vector<8x128xf32>
    %90 = arith.mulf %80, %89 : vector<8x128xf32>
    %91 = arith.addf %87, %90 : vector<8x128xf32>
    %c5_31 = arith.constant 5 : index
    %c0_32 = arith.constant 0 : index
    %c0_33 = arith.constant 0 : index
    %92 = vector.load %arg4[%c5_31, %c0_32, %c0_33] : memref<8x8x128xf32, #tpu.memory_space<vmem>>, vector<1x8x128xf32>
    %93 = vector.shape_cast %92 : vector<1x8x128xf32> to vector<8x128xf32>
    %94 = vector.shape_cast %91 : vector<8x128xf32> to vector<1x8x128xf32>
    tpu.vector_store %arg4[%c5_31, %c0_32, %c0_33], %94 {strides = array<i32>} : memref<8x8x128xf32, #tpu.memory_space<vmem>>, vector<1x8x128xf32>,
    %c7 = arith.constant 7 : index
    %c0_34 = arith.constant 0 : index
    %c0_35 = arith.constant 0 : index
    %95 = vector.load %arg2[%c7, %c0_34, %c0_35] : memref<8x8x128xf32, #tpu.memory_space<vmem>>, vector<1x8x128xf32>
    %96 = vector.shape_cast %95 : vector<1x8x128xf32> to vector<8x128xf32>
    %97 = vector.extract_strided_slice %0 {offsets = [0, 18], sizes = [8, 1], strides = [1, 1]} : vector<8x24xf32> to vector<8x1xf32>
    %98 = vector.broadcast %97 : vector<8x1xf32> to vector<8x128xf32>
    %99 = arith.mulf %64, %98 : vector<8x128xf32>
    %100 = vector.extract_strided_slice %0 {offsets = [0, 19], sizes = [8, 1], strides = [1, 1]} : vector<8x24xf32> to vector<8x1xf32>
    %101 = vector.broadcast %100 : vector<8x1xf32> to vector<8x128xf32>
    %102 = arith.mulf %80, %101 : vector<8x128xf32>
    %103 = arith.addf %99, %102 : vector<8x128xf32>
    %104 = vector.extract_strided_slice %0 {offsets = [0, 20], sizes = [8, 1], strides = [1, 1]} : vector<8x24xf32> to vector<8x1xf32>
    %105 = vector.broadcast %104 : vector<8x1xf32> to vector<8x128xf32>
    %106 = arith.mulf %96, %105 : vector<8x128xf32>
    %107 = arith.addf %103, %106 : vector<8x128xf32>
    %c6_36 = arith.constant 6 : index
    %c0_37 = arith.constant 0 : index
    %c0_38 = arith.constant 0 : index
    %108 = vector.load %arg4[%c6_36, %c0_37, %c0_38] : memref<8x8x128xf32, #tpu.memory_space<vmem>>, vector<1x8x128xf32>
    %109 = vector.shape_cast %108 : vector<1x8x128xf32> to vector<8x128xf32>
    %110 = vector.shape_cast %107 : vector<8x128xf32> to vector<1x8x128xf32>
    tpu.vector_store %arg4[%c6_36, %c0_37, %c0_38], %110 {strides = array<i32>} : memref<8x8x128xf32, #tpu.memory_space<vmem>>, vector<1x8x128xf32>,
    %111 = vector.extract_strided_slice %0 {offsets = [0, 21], sizes = [8, 1], strides = [1, 1]} : vector<8x24xf32> to vector<8x1xf32>
    %112 = vector.broadcast %111 : vector<8x1xf32> to vector<8x128xf32>
    %113 = arith.mulf %80, %112 : vector<8x128xf32>
    %114 = vector.extract_strided_slice %0 {offsets = [0, 22], sizes = [8, 1], strides = [1, 1]} : vector<8x24xf32> to vector<8x1xf32>
    %115 = vector.broadcast %114 : vector<8x1xf32> to vector<8x128xf32>
    %116 = arith.mulf %96, %115 : vector<8x128xf32>
    %117 = arith.addf %113, %116 : vector<8x128xf32>
    %c7_39 = arith.constant 7 : index
    %c0_40 = arith.constant 0 : index
    %c0_41 = arith.constant 0 : index
    %118 = vector.load %arg4[%c7_39, %c0_40, %c0_41] : memref<8x8x128xf32, #tpu.memory_space<vmem>>, vector<1x8x128xf32>
    %119 = vector.shape_cast %118 : vector<1x8x128xf32> to vector<8x128xf32>
    %120 = vector.shape_cast %117 : vector<8x128xf32> to vector<1x8x128xf32>
    tpu.vector_store %arg4[%c7_39, %c0_40, %c0_41], %120 {strides = array<i32>} : memref<8x8x128xf32, #tpu.memory_space<vmem>>, vector<1x8x128xf32>,
    return
  }
  func.func @transform_0(%arg0: i32, %arg1: i32) -> (i32, i32, i32) {
    %c0_i32 = arith.constant 0 : i32
    %c0_i32_0 = arith.constant 0 : i32
    return %c0_i32, %arg0, %arg1 : i32, i32, i32
  }
  func.func @transform_1(%arg0: i32, %arg1: i32) -> (i32, i32) {
    %c0_i32 = arith.constant 0 : i32
    %c0_i32_0 = arith.constant 0 : i32
    return %arg0, %c0_i32 : i32, i32
  }
  func.func @transform_2(%arg0: i32, %arg1: i32) -> (i32, i32, i32) {
    %c0_i32 = arith.constant 0 : i32
    %c0_i32_0 = arith.constant 0 : i32
    return %c0_i32, %arg0, %arg1 : i32, i32, i32
  }
}

</mosaic_0001>

<bundles_post_ra>
// kernel: stsc_forward.1
= control target key start
LH: loop header
LB: loop body
LE: loop exit
PB: predicated region body
PF: predicated region fallthrough
CT: control target
= control target key end

     0   :  { %s736_s9 = smov 0   ;;  %s738_s10 = smov 0   ;;  %s863_s0 = inlined_call_operand.vmem [shape: f32[8,8,256], index: 0, kind: input, shape index: {}]   ;;  %s864_s1 = inlined_call_operand.vmem [shape: f32[8,24], index: 1, kind: input, shape index: {}]   ;;  %s865_s2 = inlined_call_operand.vmem [shape: f32[8,8,256], index: 2, kind: output, shape index: {}]  }
   0x1   :  { %s740_s11 = smov 0   ;;  %s742_s12 = smov 0  }
   0x2   :  { %s744_s13 = smov 0  }
   0x3 LB: > { %s21_s14 = sadd.s32 1, %s693_s12  ;;  %s546_s15 = sadd.s32 4294967295, %s697_s13   ;;  %s697_s13 = sphi %s744_s13, %s12_s13   ;;  %s693_s12 = sphi %s742_s12, %s870_s12   ;;  %s689_s11 = sphi %s740_s11, %s869_s11   ;;  %s685_s10 = sphi %s738_s10, %s868_s10   ;;  %s681_s9 = sphi %s736_s9, %s867_s9  }
   0x4   : > { %p22_p0 = scmp.ge.s32.totalorder %s21_s14, 2  ;;  %p40_p1 = scmp.ne.s32.totalorder %s685_s10, %s681_s9 }
   0x5   : > { %p41_p2 = scmp.eq.s32.totalorder %s697_s13, 0  ;;  %p98_p4 = scmp.eq.s32.totalorder %s546_s15, 1 }
   0x6   : > { %s872_s14 = smov (%p22_p0, %s21_s14), 0  ;;  %s33_s17 = sadd.s32 1, %s685_s10 }
   0x7   : > { %p42_p3 = por %p41_p2, %p40_p1  ;;  %s29_s16 = ssub.s32 %s693_s12, %s872_s14 }
   0x8   : > { %p31_p5 = scmp.eq.s32.totalorder %s29_s16, 0  ;;  %p771_p6 = por %p98_p4, %p40_p1 }
   0x9   : > { %p550_p7 = scmp.ge.s32.totalorder %s697_s13, 2 }
   0xa   : > { %s776_s19 = scalar_select %p31_p5, %s685_s10, %s33_s17  }
   0xb   : > { %127 = sbr.rel (%p550_p7) target bundleno = 26 (0x1a), region = 20 }
  0x12   : > { %130 = sbr.rel (!%p42_p3) target bundleno = 26 (0x1a), region = 24  ;;  %s132_s20 = sand.u32 (%p42_p3), 1, %s685_s10  }
  0x13   : > { %s552_s21 = sshll.u32 (%p42_p3), %s693_s12, 3  ;;  %s551_s22 = sshll.u32 (%p42_p3), %s132_s20, 6 }
  0x14   : > { %s138_s25 = scalar_lea.vmem (%p42_p3), %s863_s0, %s552_s21  ;;  %s134_s26 = scalar_lea.vmem (%p42_p3), [#allocation2], %s551_s22 }
  0x15   : > { %v180_v0 = vld [vmem:[%s138_s25] sm:$0xff] (%p42_p3)  ;;  %v182_v1 = vld [vmem:[%s138_s25 + $0x10] sm:$0xff] (%p42_p3) }
  0x16   : > { %v184_v2 = vld [vmem:[%s138_s25 + $0x20] sm:$0xff] (%p42_p3)  ;;  %181 = vst [vmem:[%s134_s26] sm:$0xff] (%p42_p3), %v180_v0  ;;  %183 = vst [vmem:[%s134_s26 + $0x8] sm:$0xff] (%p42_p3), %v182_v1  ;;  %v186_v3 = vld [vmem:[%s138_s25 + $0x30] sm:$0xff] (%p42_p3) }
  0x17   : > { %185 = vst [vmem:[%s134_s26 + $0x10] sm:$0xff] (%p42_p3), %v184_v2  ;;  %v188_v4 = vld [vmem:[%s138_s25 + $0x40] sm:$0xff] (%p42_p3)  ;;  %v190_v5 = vld [vmem:[%s138_s25 + $0x50] sm:$0xff] (%p42_p3)  ;;  %187 = vst [vmem:[%s134_s26 + $0x18] sm:$0xff] (%p42_p3), %v186_v3 }
  0x18   : > { %189 = vst [vmem:[%s134_s26 + $0x20] sm:$0xff] (%p42_p3), %v188_v4  ;;  %191 = vst [vmem:[%s134_s26 + $0x28] sm:$0xff] (%p42_p3), %v190_v5  ;;  %v192_v6 = vld [vmem:[%s138_s25 + $0x60] sm:$0xff] (%p42_p3)  ;;  %v194_v7 = vld [vmem:[%s138_s25 + $0x70] sm:$0xff] (%p42_p3) }
  0x19   : > { %193 = vst [vmem:[%s134_s26 + $0x30] sm:$0xff] %v192_v6  ;;  %195 = vst [vmem:[%s134_s26 + $0x38] sm:$0xff] %v194_v7 }
  0x1a PF: > { %p553_p8 = scmp.ge.s32.totalorder %s697_s13, 1  ;;  %p200_p9 = scmp.lt.s32.totalorder %s697_s13, 3 }
  0x1c   : > { %p201_p10 = pnand %p553_p8, %p200_p9 }
  0x1d   : > { %v789_v8 = vld [vmem:[%s864_s1] sm:$0xff] (!%p201_p10)  ;;  %v699_v9 = vmov (!%p201_p10), 3   ;;  %v700_v10 = vmov (!%p201_p10), 1   ;;  %v701_v11 = vmov (!%p201_p10), 4   ;;  %v702_v12 = vmov (!%p201_p10), 2   ;;  %s207_s29 = sand.u32 (!%p201_p10), 1, %s681_s9  }
  0x1e   : > { %204 = sbr.rel (%p201_p10) target bundleno = 237 (0xed), region = 62  ;;  %638 = vset.pattern.permute.xlu1 (!%p201_p10), %v699_v9  ;;  %636 = vset.pattern.permute.xlu0 (!%p201_p10), %v700_v10  ;;  %v703_v13 = vmov (!%p201_p10), 5   ;;  %v704_v14 = vmov (!%p201_p10), 6   ;;  %v705_v15 = vmov (!%p201_p10), 7   ;;  %v706_v16 = vmov (!%p201_p10), 10   ;;  %s554_s30 = sshll.u32 (!%p201_p10), %s207_s29, 6 }
  0x1f   : > { %255 = vperm.xlu1 (!%p201_p10), %638, %v789_v8   ;;  %241 = vperm.xlu0 (!%p201_p10), %636, %v789_v8   ;;  %v707_v17 = vmov (!%p201_p10), 9   ;;  %v708_v18 = vmov (!%p201_p10), 15   ;;  %v709_v19 = vmov (!%p201_p10), 12   ;;  %v710_v20 = vmov (!%p201_p10), 19   ;;  %s814_s3 = scalar_lea.vmem (!%p201_p10), [#allocation2], %s554_s30  ;;  %s819_s4 = scalar_lea.vmem (!%p201_p10), [#allocation3], %s554_s30 }
  0x20   : > { %v711_v21 = vmov (!%p201_p10), 13   ;;  %v712_v22 = vmov (!%p201_p10), 14   ;;  %v713_v23 = vmov (!%p201_p10), 16   ;;  %v714_v24 = vmov (!%p201_p10), 21   ;;  %v236_v33 = vld [vmem:[%s814_s3] sm:$0xff] (!%p201_p10)  ;;  %v556_v34 = vld [vmem:[%s814_s3 + $0x8] sm:$0xff] (!%p201_p10) }
  0x21   : > { %v715_v25 = vmov (!%p201_p10), 18   ;;  %v716_v26 = vmov (!%p201_p10), 22   ;;  %v717_v27 = vmov (!%p201_p10), 8   ;;  %v718_v28 = vmov (!%p201_p10), 11   ;;  %v557_v40 = vld [vmem:[%s814_s3 + $0x10] sm:$0xff] (!%p201_p10)  ;;  %v561_v54 = vld [vmem:[%s814_s3 + $0x20] sm:$0xff] (!%p201_p10) }
  0x22   : > { %v719_v29 = vmov (!%p201_p10), 17   ;;  %v720_v30 = vmov (!%p201_p10), 20   ;;  %v563_v55 = vld [vmem:[%s814_s3 + $0x28] sm:$0xff] (!%p201_p10)  ;;  %v559_v56 = vld [vmem:[%s814_s3 + $0x18] sm:$0xff] (!%p201_p10) }
  0x23   : > { %639 = vset.pattern.permute.xlu1 (!%p201_p10), %v701_v11  ;;  %637 = vset.pattern.permute.xlu0 (!%p201_p10), %v702_v12 }
  0x24   : > { %260 = vperm.xlu1 (!%p201_p10), %639, %v789_v8   ;;  %246 = vperm.xlu0 (!%p201_p10), %637, %v789_v8  }
  0x25   : > { %s571_s5 = sshll.u32 (%p771_p6), %s689_s11, 3 }
  0x26   : > { %s401_s8 = scalar_lea.vmem (%p771_p6), %s865_s2, %s571_s5 }
  0x28   : > { %640 = vset.pattern.permute.xlu1 %v703_v13  ;;  %641 = vset.pattern.permute.xlu0 %v704_v14 }
  0x29   : > { %266 = vperm.xlu1 %640, %v789_v8   ;;  %276 = vperm.xlu0 %641, %v789_v8  }
  0x2d   : > { %642 = vset.pattern.permute.xlu1 %v705_v15  ;;  %644 = vset.pattern.permute.xlu0 %v706_v16  ;;  %v565_v16 = vld [vmem:[%s814_s3 + $0x30] sm:$0xff] }
  0x2e   : > { %281 = vperm.xlu1 %642, %v789_v8   ;;  %302 = vperm.xlu0 %644, %v789_v8  }
  0x32   : > { %643 = vset.pattern.permute.xlu1 %v707_v17  ;;  %647 = vset.pattern.permute.xlu0 %v708_v18 }
  0x33   : > { %297 = vperm.xlu1 %643, %v789_v8   ;;  %339 = vperm.xlu0 %647, %v789_v8  }
  0x37   : > { %645 = vset.pattern.permute.xlu1 %v709_v19  ;;  %650 = vset.pattern.permute.xlu0 %v710_v20 }
  0x38   : > { %318 = vperm.xlu1 %645, %v789_v8   ;;  %365 = vperm.xlu0 %650, %v789_v8  }
  0x3c   : > { %646 = vset.pattern.permute.xlu1 %v711_v21  ;;  %653 = vset.pattern.permute.xlu0 %v712_v22 }
  0x3d   : > { %323 = vperm.xlu1 %646, %v789_v8   ;;  %329 = vperm.xlu0 %653, %v789_v8  }
  0x41   : > { %648 = vset.pattern.permute.xlu1 %v713_v23  ;;  %656 = vset.pattern.permute.xlu0 %v714_v24  ;;  %v567_v23 = vld [vmem:[%s814_s3 + $0x38] sm:$0xff] }
  0x42   : > { %344 = vperm.xlu1 %648, %v789_v8   ;;  %379 = vperm.xlu0 %656, %v789_v8  }
  0x46   : > { %649 = vset.pattern.permute.xlu1 %v715_v25  ;;  %658 = vset.pattern.permute.xlu0 %v716_v26 }
  0x47   : > { %360 = vperm.xlu1 %649, %v789_v8  }
  0x4b   : > { %651 = vset.pattern.permute.xlu1 %v717_v27 }
  0x4c   : > { %287 = vperm.xlu1 %651, %v789_v8  }
  0x50   : > { %652 = vset.pattern.permute.xlu1 %v718_v28 }
  0x51   : > { %308 = vperm.xlu1 %652, %v789_v8  }
  0x55   : > { %654 = vset.pattern.permute.xlu1 %v719_v29 }
  0x56   : > { %350 = vperm.xlu1 %654, %v789_v8  }
  0x5a   : > { %655 = vset.pattern.permute.xlu1 %v720_v30 }
  0x5b   : > { %371 = vperm.xlu1 %655, %v789_v8  }
  0x5f   : > { %657 = vset.pattern.permute.xlu1 %v716_v26 }
  0x60   : > { %384 = vperm.xlu1 %657, %v789_v8  }
  0x9e   : > { %v256_v31 = vpop.permute.xlu1 %255  ;;  %v242_v32 = vpop.permute.xlu0 %241 }
  0x9f   : > { %v244_v35 = vmul.f32 %v242_v32, %v236_v33  ;;  %v258_v42 = vmul.f32 %v256_v31, %v236_v33 }
  0xa3   : > { %v261_v36 = vpop.permute.xlu1 %260  ;;  %v247_v37 = vpop.permute.xlu0 %246 }
  0xa4   : > { %v249_v38 = vmul.f32 %v556_v34, %v247_v37  ;;  %v263_v39 = vmul.f32 %v556_v34, %v261_v36 }
  0xa6   : > { %v250_v41 = vadd.f32 %v249_v38, %v244_v35  ;;  %v264_v45 = vadd.f32 %v263_v39, %v258_v42 }
  0xa8   : > { %v267_v43 = vpop.permute.xlu1 %266  ;;  %251 = vst [vmem:[%s819_s4] sm:$0xff] %v250_v41  ;;  %v277_v44 = vpop.permute.xlu0 %276 }
  0xa9   : > { %v269_v46 = vmul.f32 %v557_v40, %v267_v43  ;;  %v279_v3 = vmul.f32 %v556_v34, %v277_v44 }
  0xab   : > { %v270_v47 = vadd.f32 %v269_v46, %v264_v45 }
  0xad   : > { %558 = vst [vmem:[%s819_s4 + $0x8] sm:$0xff] %v270_v47  ;;  %v282_v48 = vpop.permute.xlu1 %281  ;;  %v303_v49 = vpop.permute.xlu0 %302 }
  0xae   : > { %v284_v2 = vmul.f32 %v557_v40, %v282_v48  ;;  %v305_v8 = vmul.f32 %v559_v56, %v303_v49 }
  0xaf   : > { %v443_v33 = vld [vmem:[%s819_s4] sm:$0xff] (%p771_p6) }
  0xb0   : > { %v285_v5 = vadd.f32 %v284_v2, %v279_v3  ;;  %444 = vst [vmem:[%s401_s8] sm:$0xff] (%p771_p6), %v443_v33 }
  0xb2   : > { %v298_v50 = vpop.permute.xlu1 %297  ;;  %v340_v51 = vpop.permute.xlu0 %339 }
  0xb3   : > { %v300_v7 = vmul.f32 %v557_v40, %v298_v50  ;;  %v342_v13 = vmul.f32 %v561_v54, %v340_v51 }
  0xb4   : > { %v445_v34 = vld [vmem:[%s819_s4 + $0x8] sm:$0xff] (%p771_p6) }
  0xb5   : > { %v306_v11 = vadd.f32 %v305_v8, %v300_v7  ;;  %446 = vst [vmem:[%s401_s8 + $0x10] sm:$0xff] (%p771_p6), %v445_v34 }
  0xb7   : > { %v319_v52 = vpop.permute.xlu1 %318  ;;  %v366_v53 = vpop.permute.xlu0 %365 }
  0xb8   : > { %v321_v59 = vmul.f32 %v559_v56, %v319_v52  ;;  %v368_v20 = vmul.f32 %v565_v16, %v366_v53 }
  0xbc   : > { %v324_v57 = vpop.permute.xlu1 %323  ;;  %v330_v58 = vpop.permute.xlu0 %329 }
  0xbd   : > { %v326_v60 = vmul.f32 %v561_v54, %v324_v57  ;;  %v332_v61 = vmul.f32 %v563_v55, %v330_v58 }
  0xbf   : > { %v327_v62 = vadd.f32 %v326_v60, %v321_v59 }
  0xc1   : > { %v333_v63 = vadd.f32 %v332_v61, %v327_v62  ;;  %v345_v0 = vpop.permute.xlu1 %344  ;;  %v380_v27 = vpop.permute.xlu0 %379 }
  0xc2   : > { %v347_v14 = vmul.f32 %v563_v55, %v345_v0  ;;  %v382_v29 = vmul.f32 %v565_v16, %v380_v27 }
  0xc3   : > { %564 = vst [vmem:[%s819_s4 + $0x20] sm:$0xff] %v333_v63 }
  0xc4   : > { %v348_v18 = vadd.f32 %v347_v14, %v342_v13 }
  0xc6   : > { %v361_v1 = vpop.permute.xlu1 %360 }
  0xc7   : > { %v363_v21 = vmul.f32 %v563_v55, %v361_v1 }
  0xc9   : > { %v369_v25 = vadd.f32 %v368_v20, %v363_v21 }
  0xca   : > { %v451_v37 = vld [vmem:[%s819_s4 + $0x20] sm:$0xff] (%p771_p6) }
  0xcb   : > { %v288_v4 = vpop.permute.xlu1 %287  ;;  %452 = vst [vmem:[%s401_s8 + $0x40] sm:$0xff] (%p771_p6), %v451_v37 }
  0xcc   : > { %v290_v6 = vmul.f32 %v559_v56, %v288_v4 }
  0xce   : > { %v291_v9 = vadd.f32 %v290_v6, %v285_v5 }
  0xd0   : > { %560 = vst [vmem:[%s819_s4 + $0x10] sm:$0xff] %v291_v9  ;;  %v309_v10 = vpop.permute.xlu1 %308 }
  0xd1   : > { %v311_v12 = vmul.f32 %v561_v54, %v309_v10 }
  0xd3   : > { %v312_v15 = vadd.f32 %v311_v12, %v306_v11 }
  0xd5   : > { %562 = vst [vmem:[%s819_s4 + $0x18] sm:$0xff] %v312_v15  ;;  %v351_v17 = vpop.permute.xlu1 %350 }
  0xd6   : > { %v353_v19 = vmul.f32 %v565_v16, %v351_v17 }
  0xd7   : > { %v447_v35 = vld [vmem:[%s819_s4 + $0x10] sm:$0xff] (%p771_p6) }
  0xd8   : > { %v354_v22 = vadd.f32 %v353_v19, %v348_v18  ;;  %448 = vst [vmem:[%s401_s8 + $0x20] sm:$0xff] (%p771_p6), %v447_v35 }
  0xda   : > { %566 = vst [vmem:[%s819_s4 + $0x28] sm:$0xff] %v354_v22  ;;  %v372_v24 = vpop.permute.xlu1 %371 }
  0xdb   : > { %v374_v26 = vmul.f32 %v567_v23, %v372_v24 }
  0xdc   : > { %v449_v36 = vld [vmem:[%s819_s4 + $0x18] sm:$0xff] (%p771_p6) }
  0xdd   : > { %v375_v28 = vadd.f32 %v374_v26, %v369_v25  ;;  %450 = vst [vmem:[%s401_s8 + $0x30] sm:$0xff] (%p771_p6), %v449_v36 }
  0xde   : > { %397 = sbr.rel (!%p771_p6) target bundleno = 237 (0xed), region = 70 }
  0xdf   : > { %568 = vst [vmem:[%s819_s4 + $0x30] sm:$0xff] %v375_v28  ;;  %v385_v30 = vpop.permute.xlu1 %384 }
  0xe0   : > { %v387_v31 = vmul.f32 %v567_v23, %v385_v30 }
  0xe1   : > { %v453_v38 = vld [vmem:[%s819_s4 + $0x28] sm:$0xff] (%p771_p6) }
  0xe2   : > { %v388_v32 = vadd.f32 %v387_v31, %v382_v29  ;;  %454 = vst [vmem:[%s401_s8 + $0x50] sm:$0xff] (%p771_p6), %v453_v38 }
  0xe4   : > { %569 = vst [vmem:[%s819_s4 + $0x38] sm:$0xff] %v388_v32 }
  0xe6   : > { %v455_v39 = vld [vmem:[%s819_s4 + $0x30] sm:$0xff] }
  0xe7   : > { %456 = vst [vmem:[%s401_s8 + $0x60] sm:$0xff] %v455_v39 }
  0xeb   : > { %v457_v40 = vld [vmem:[%s819_s4 + $0x38] sm:$0xff] }
  0xec   : > { %458 = vst [vmem:[%s401_s8 + $0x70] sm:$0xff] %v457_v40 }
  0xed PF: > { %s12_s13 = sadd.s32 1, %s697_s13   ;;  %s867_s9 = smov %s685_s10 }
  0xee   : > { %p9_p11 = scmp.ge.s32.totalorder %s12_s13, 4   ;;  %s868_s10 = smov %s776_s19 }
  0xef   : > { %s869_s11 = smov %s693_s12  ;;  %s870_s12 = smov %s872_s14 }
  0xf0   :  { %11 = sbr.rel (!%p9_p11) target bundleno = 3 (0x3), region = 156 }

</bundles_post_ra>
